<compile_context>
chip_gen: v7x
topology: tpu7x:2x2x1
jax: 0.10.0
libtpu: 0.0.40
codegen_flags: <defaults>
</compile_context>

<pallas_src>
import functools

import jax
import jax.numpy as jnp
from jax import lax
from jax.experimental import pallas as pl
from jax.experimental.pallas import tpu as pltpu

_PAD = 128  # left lane-pad inside the conv2 staging scratch (keeps the store aligned)


def _bottleneck_kernel(x_ref, w1_ref, w2_ref, w3_ref, mask_ref, o_ref, buf, *, W):
    # x_ref    : (1, Cin, H*W)  f32   current batch element, channels-major, lane-dense
    # w1_ref   : (width, Cin)   bf16  conv1 (1x1) weight
    # w2_ref   : (3, 3, width, width) bf16  conv2 (3x3) weight, (kh, kw, out, in)
    # w3_ref   : (Cout, width)  bf16  conv3 (1x1) weight
    # mask_ref : (9, H*W)       f32   per-tap validity mask for zero padding
    # o_ref    : (1, Cout, H*W) f32
    # buf      : (width, _PAD + H*W + _PAD) f32 VMEM scratch (lane-padded staging)
    _, Cin, HW = x_ref.shape
    width = w1_ref.shape[0]

    x = x_ref[0]  # (Cin, HW) f32, lane-dense

    # ---- conv1x1 (Cin -> width) + ReLU : bf16 MXU matmul, f32 accumulation ----
    t1 = jnp.dot(w1_ref[...], x.astype(jnp.bfloat16),
                 preferred_element_type=jnp.float32)
    t1 = jnp.maximum(t1, 0.0)                                  # (width, HW) f32

    # Stage ReLU(conv1) into the lane-padded scratch; the store starts at lane
    # offset _PAD (multiple of 128) so it is a full, unmasked store.
    buf[:, _PAD:_PAD + HW] = t1

    # ---- conv3x3 (stride=1, pad=1) as 9 shifted, masked matmuls (f32 acc) ----
    # Tap (dy, dx) needs t1 shifted by s = (dy-1)*W + (dx-1) along the flat H*W
    # lane axis; out-of-bounds / row-wrap lanes are zeroed by the precomputed
    # mask (so uninitialized pad lanes of `buf` are never used).
    acc = None
    for dy in range(3):
        for dx in range(3):
            s = (dy - 1) * W + (dx - 1)
            win = buf[:, _PAD + s:_PAD + s + HW]               # (width, HW) f32
            m = mask_ref[dy * 3 + dx:dy * 3 + dx + 1, :]       # (1, HW) f32
            tap = jnp.where(m != 0.0, win, 0.0).astype(jnp.bfloat16)
            d = jnp.dot(w2_ref[dy, dx], tap,
                        preferred_element_type=jnp.float32)    # (width, HW)
            acc = d if acc is None else acc + d
    t2 = jnp.maximum(acc, 0.0).astype(jnp.bfloat16)            # (width, HW)

    # ---- conv1x1 (width -> Cout) + residual add + ReLU (f32), single store ----
    t3 = jnp.dot(w3_ref[...], t2, preferred_element_type=jnp.float32)
    o_ref[0] = jnp.maximum(t3 + x, 0.0).astype(o_ref.dtype)


def bottleneck_forward(x_nchw, w1, w2, w3):
    """x_nchw: (N, Cin, H, W) float32.
    w1: (width, Cin, 1, 1), w2: (width, width, 3, 3), w3: (Cout, width, 1, 1)
    (PyTorch OIHW weight layout). Returns (N, Cout, H, W) float32."""
    N, Cin, H, W = x_nchw.shape
    width = w1.shape[0]
    Cout = w3.shape[0]
    assert Cout == Cin, "residual add requires inplanes == planes * expansion"
    HW = H * W

    # Lane-dense layout: keep NCHW and just flatten H*W into the last (lane)
    # dim — a free reshape, no transpose.
    x = x_nchw.reshape(N, Cin, HW)

    # Weights as (out, in) matrices for `w @ act`, cast to bf16 for the MXU.
    w1_m = w1[:, :, 0, 0].astype(jnp.bfloat16)                    # (width, Cin)
    w2_m = jnp.transpose(w2, (2, 3, 0, 1)).astype(jnp.bfloat16)   # (3,3,out,in)
    w3_m = w3[:, :, 0, 0].astype(jnp.bfloat16)                    # (Cout, width)

    # Precompute per-tap validity masks for the zero-padded 3x3 conv.
    yy = jnp.arange(H).reshape(H, 1)
    xx = jnp.arange(W).reshape(1, W)
    taps = []
    for dy in range(3):
        for dx in range(3):
            valid = ((yy + dy - 1 >= 0) & (yy + dy - 1 < H) &
                     (xx + dx - 1 >= 0) & (xx + dx - 1 < W))      # (H, W) bool
            taps.append(valid.reshape(HW))
    mask = jnp.stack(taps, axis=0).astype(jnp.float32)            # (9, HW)

    flops = 2 * N * HW * (Cin * width + 9 * width * width + width * Cout)
    bytes_accessed = (N * Cin * HW + N * Cout * HW) * 4 + mask.size * 4 \
        + (w1_m.size + w2_m.size + w3_m.size) * 2

    out = pl.pallas_call(
        functools.partial(_bottleneck_kernel, W=W),
        out_shape=jax.ShapeDtypeStruct((N, Cout, HW), x.dtype),
        grid=(N,),
        in_specs=[
            pl.BlockSpec((1, Cin, HW), lambda n: (n, 0, 0)),
            pl.BlockSpec((width, Cin), lambda n: (0, 0)),
            pl.BlockSpec((3, 3, width, width), lambda n: (0, 0, 0, 0)),
            pl.BlockSpec((Cout, width), lambda n: (0, 0)),
            pl.BlockSpec((9, HW), lambda n: (0, 0)),
        ],
        out_specs=pl.BlockSpec((1, Cout, HW), lambda n: (n, 0, 0)),
        scratch_shapes=[pltpu.VMEM((width, _PAD + HW + _PAD), jnp.float32)],
        compiler_params=pltpu.CompilerParams(
            dimension_semantics=("parallel",)),
        cost_estimate=pl.CostEstimate(
            flops=flops, transcendentals=0, bytes_accessed=bytes_accessed),
    )(x, w1_m, w2_m, w3_m, mask)

    return out.reshape(N, Cout, H, W)


def _reference(x_nchw, w1, w2, w3):
    """Pure-JAX f32 reference using lax.conv (NCHW, OIHW), mirroring PyTorch."""
    dn = lax.conv_dimension_numbers(x_nchw.shape, w1.shape, ("NCHW", "OIHW", "NCHW"))
    t = lax.conv_general_dilated(x_nchw, w1, (1, 1), "VALID", dimension_numbers=dn)
    t = jnp.maximum(t, 0.0)
    dn2 = lax.conv_dimension_numbers(t.shape, w2.shape, ("NCHW", "OIHW", "NCHW"))
    t = lax.conv_general_dilated(t, w2, (1, 1), ((1, 1), (1, 1)), dimension_numbers=dn2)
    t = jnp.maximum(t, 0.0)
    dn3 = lax.conv_dimension_numbers(t.shape, w3.shape, ("NCHW", "OIHW", "NCHW"))
    t = lax.conv_general_dilated(t, w3, (1, 1), "VALID", dimension_numbers=dn3)
    return jnp.maximum(t + x_nchw, 0.0)


if __name__ == "__main__":
    # Bottleneck(inplanes=16, planes=4): width = 4, out channels = 4*4 = 16.
    N, inplanes, planes, H, W = 2, 16, 4, 16, 16
    width = planes            # base_width=64, groups=1
    expansion = 4
    Cout = planes * expansion  # == inplanes, so the residual add is valid

    key = jax.random.PRNGKey(0)
    kx, k1, k2, k3 = jax.random.split(key, 4)
    x = jax.random.normal(kx, (N, inplanes, H, W), jnp.float32)
    # PyTorch OIHW conv weights, deterministic init
    w1 = jax.random.normal(k1, (width, inplanes, 1, 1), jnp.float32) * 0.1
    w2 = jax.random.normal(k2, (width, width, 3, 3), jnp.float32) * 0.1
    w3 = jax.random.normal(k3, (Cout, width, 1, 1), jnp.float32) * 0.1

    out = bottleneck_forward(x, w1, w2, w3)
    out = jax.block_until_ready(out)

    ref = _reference(x, w1, w2, w3)
    assert out.shape == (N, Cout, H, W)
    # bf16 MXU inputs with f32 accumulation -> slightly looser tolerance vs f32 ref
    assert jnp.allclose(out, ref, atol=5e-2, rtol=5e-2), "mismatch vs reference"

    print("KERNEL_OK")
</pallas_src>

<mosaic_0001>
module attributes {stable_mosaic.version = 11 : i64} {
  func.func @_bottleneck_kernel(%arg0: i32, %arg1: memref<1x16x256xf32, #tpu.memory_space<vmem>>, %arg2: memref<4x16xbf16, #tpu.memory_space<vmem>>, %arg3: memref<3x3x4x4xbf16, #tpu.memory_space<vmem>>, %arg4: memref<16x4xbf16, #tpu.memory_space<vmem>>, %arg5: memref<9x256xf32, #tpu.memory_space<vmem>>, %arg6: memref<1x16x256xf32, #tpu.memory_space<vmem>>, %arg7: memref<4x512xf32, #tpu.memory_space<vmem>>) attributes {dimension_semantics = [#tpu.dimension_semantics<parallel>], iteration_bounds = array<i64: 2>, scalar_prefetch = 0 : i64, scratch_operands = 1 : i64, tpu.core_type = #tpu.core_type<tc>, window_params = [{transform_indices = @transform_0, window_bounds = array<i64: 1, 16, 256>}, {pipeline_mode = #tpu.pipeline_mode<synchronous>, transform_indices = @transform_1, window_bounds = array<i64: 4, 16>}, {pipeline_mode = #tpu.pipeline_mode<synchronous>, transform_indices = @transform_2, window_bounds = array<i64: 3, 3, 4, 4>}, {pipeline_mode = #tpu.pipeline_mode<synchronous>, transform_indices = @transform_3, window_bounds = array<i64: 16, 4>}, {pipeline_mode = #tpu.pipeline_mode<synchronous>, transform_indices = @transform_4, window_bounds = array<i64: 9, 256>}, {transform_indices = @transform_5, window_bounds = array<i64: 1, 16, 256>}]} {
    %c0 = arith.constant 0 : index
    %c0_0 = arith.constant 0 : index
    %c0_1 = arith.constant 0 : index
    %0 = vector.load %arg1[%c0, %c0_0, %c0_1] : memref<1x16x256xf32, #tpu.memory_space<vmem>>, vector<1x16x256xf32>
    %1 = vector.shape_cast %0 : vector<1x16x256xf32> to vector<16x256xf32>
    %c0_2 = arith.constant 0 : index
    %c0_3 = arith.constant 0 : index
    %2 = vector.load %arg2[%c0_2, %c0_3] : memref<4x16xbf16, #tpu.memory_space<vmem>>, vector<4x16xbf16>
    %3 = arith.truncf %1 : vector<16x256xf32> to vector<16x256xbf16>
    %cst = arith.constant dense<0.000000e+00> : vector<4x256xf32>
    %4 = tpu.matmul %2, %3, %cst {dimension_numbers = #tpu.dot_dimension_numbers<[1], [0], [0], [1], [0, 0, 1, 1], [], []>} : vector<4x16xbf16>, vector<16x256xbf16>, vector<4x256xf32> -> vector<4x256xf32>
    %cst_4 = arith.constant 0.000000e+00 : f32
    %5 = vector.broadcast %cst_4 : f32 to vector<4x256xf32>
    %6 = arith.maximumf %4, %5 : vector<4x256xf32>
    %c0_5 = arith.constant 0 : index
    %c128 = arith.constant 128 : index
    %7 = vector.load %arg7[%c0_5, %c128] : memref<4x512xf32, #tpu.memory_space<vmem>>, vector<4x256xf32>
    tpu.vector_store %arg7[%c0_5, %c128], %6 {strides = array<i32>} : memref<4x512xf32, #tpu.memory_space<vmem>>, vector<4x256xf32>,
    %c0_6 = arith.constant 0 : index
    %c111 = arith.constant 111 : index
    %8 = vector.load %arg7[%c0_6, %c111] : memref<4x512xf32, #tpu.memory_space<vmem>>, vector<4x256xf32>
    %c0_7 = arith.constant 0 : index
    %c0_8 = arith.constant 0 : index
    %9 = vector.load %arg5[%c0_7, %c0_8] : memref<9x256xf32, #tpu.memory_space<vmem>>, vector<1x256xf32>
    %cst_9 = arith.constant 0.000000e+00 : f32
    %10 = vector.broadcast %cst_9 : f32 to vector<1x256xf32>
    %11 = arith.cmpf one, %9, %10 : vector<1x256xf32>
    %cst_10 = arith.constant 0.000000e+00 : f32
    %12 = vector.shape_cast %11 : vector<1x256xi1> to vector<1x256xi1>
    %13 = vector.broadcast %12 : vector<1x256xi1> to vector<4x256xi1>
    %14 = vector.broadcast %cst_10 : f32 to vector<4x256xf32>
    %15 = arith.select %13, %8, %14 : vector<4x256xi1>, vector<4x256xf32>
    %16 = arith.truncf %15 : vector<4x256xf32> to vector<4x256xbf16>
    %c0_11 = arith.constant 0 : index
    %c0_12 = arith.constant 0 : index
    %c0_13 = arith.constant 0 : index
    %c0_14 = arith.constant 0 : index
    %17 = vector.load %arg3[%c0_11, %c0_12, %c0_13, %c0_14] : memref<3x3x4x4xbf16, #tpu.memory_space<vmem>>, vector<1x1x4x4xbf16>
    %18 = vector.shape_cast %17 : vector<1x1x4x4xbf16> to vector<4x4xbf16>
    %cst_15 = arith.constant dense<0.000000e+00> : vector<4x256xf32>
    %19 = tpu.matmul %18, %16, %cst_15 {dimension_numbers = #tpu.dot_dimension_numbers<[1], [0], [0], [1], [0, 0, 1, 1], [], []>} : vector<4x4xbf16>, vector<4x256xbf16>, vector<4x256xf32> -> vector<4x256xf32>
    %c0_16 = arith.constant 0 : index
    %c112 = arith.constant 112 : index
    %20 = vector.load %arg7[%c0_16, %c112] : memref<4x512xf32, #tpu.memory_space<vmem>>, vector<4x256xf32>
    %c1 = arith.constant 1 : index
    %c0_17 = arith.constant 0 : index
    %21 = vector.load %arg5[%c1, %c0_17] : memref<9x256xf32, #tpu.memory_space<vmem>>, vector<1x256xf32>
    %cst_18 = arith.constant 0.000000e+00 : f32
    %22 = vector.broadcast %cst_18 : f32 to vector<1x256xf32>
    %23 = arith.cmpf one, %21, %22 : vector<1x256xf32>
    %cst_19 = arith.constant 0.000000e+00 : f32
    %24 = vector.shape_cast %23 : vector<1x256xi1> to vector<1x256xi1>
    %25 = vector.broadcast %24 : vector<1x256xi1> to vector<4x256xi1>
    %26 = vector.broadcast %cst_19 : f32 to vector<4x256xf32>
    %27 = arith.select %25, %20, %26 : vector<4x256xi1>, vector<4x256xf32>
    %28 = arith.truncf %27 : vector<4x256xf32> to vector<4x256xbf16>
    %c0_20 = arith.constant 0 : index
    %c1_21 = arith.constant 1 : index
    %c0_22 = arith.constant 0 : index
    %c0_23 = arith.constant 0 : index
    %29 = vector.load %arg3[%c0_20, %c1_21, %c0_22, %c0_23] : memref<3x3x4x4xbf16, #tpu.memory_space<vmem>>, vector<1x1x4x4xbf16>
    %30 = vector.shape_cast %29 : vector<1x1x4x4xbf16> to vector<4x4xbf16>
    %cst_24 = arith.constant dense<0.000000e+00> : vector<4x256xf32>
    %31 = tpu.matmul %30, %28, %cst_24 {dimension_numbers = #tpu.dot_dimension_numbers<[1], [0], [0], [1], [0, 0, 1, 1], [], []>} : vector<4x4xbf16>, vector<4x256xbf16>, vector<4x256xf32> -> vector<4x256xf32>
    %32 = arith.addf %19, %31 : vector<4x256xf32>
    %c0_25 = arith.constant 0 : index
    %c113 = arith.constant 113 : index
    %33 = vector.load %arg7[%c0_25, %c113] : memref<4x512xf32, #tpu.memory_space<vmem>>, vector<4x256xf32>
    %c2 = arith.constant 2 : index
    %c0_26 = arith.constant 0 : index
    %34 = vector.load %arg5[%c2, %c0_26] : memref<9x256xf32, #tpu.memory_space<vmem>>, vector<1x256xf32>
    %cst_27 = arith.constant 0.000000e+00 : f32
    %35 = vector.broadcast %cst_27 : f32 to vector<1x256xf32>
    %36 = arith.cmpf one, %34, %35 : vector<1x256xf32>
    %cst_28 = arith.constant 0.000000e+00 : f32
    %37 = vector.shape_cast %36 : vector<1x256xi1> to vector<1x256xi1>
    %38 = vector.broadcast %37 : vector<1x256xi1> to vector<4x256xi1>
    %39 = vector.broadcast %cst_28 : f32 to vector<4x256xf32>
    %40 = arith.select %38, %33, %39 : vector<4x256xi1>, vector<4x256xf32>
    %41 = arith.truncf %40 : vector<4x256xf32> to vector<4x256xbf16>
    %c0_29 = arith.constant 0 : index
    %c2_30 = arith.constant 2 : index
    %c0_31 = arith.constant 0 : index
    %c0_32 = arith.constant 0 : index
    %42 = vector.load %arg3[%c0_29, %c2_30, %c0_31, %c0_32] : memref<3x3x4x4xbf16, #tpu.memory_space<vmem>>, vector<1x1x4x4xbf16>
    %43 = vector.shape_cast %42 : vector<1x1x4x4xbf16> to vector<4x4xbf16>
    %cst_33 = arith.constant dense<0.000000e+00> : vector<4x256xf32>
    %44 = tpu.matmul %43, %41, %cst_33 {dimension_numbers = #tpu.dot_dimension_numbers<[1], [0], [0], [1], [0, 0, 1, 1], [], []>} : vector<4x4xbf16>, vector<4x256xbf16>, vector<4x256xf32> -> vector<4x256xf32>
    %45 = arith.addf %32, %44 : vector<4x256xf32>
    %c0_34 = arith.constant 0 : index
    %c127 = arith.constant 127 : index
    %46 = vector.load %arg7[%c0_34, %c127] : memref<4x512xf32, #tpu.memory_space<vmem>>, vector<4x256xf32>
    %c3 = arith.constant 3 : index
    %c0_35 = arith.constant 0 : index
    %47 = vector.load %arg5[%c3, %c0_35] : memref<9x256xf32, #tpu.memory_space<vmem>>, vector<1x256xf32>
    %cst_36 = arith.constant 0.000000e+00 : f32
    %48 = vector.broadcast %cst_36 : f32 to vector<1x256xf32>
    %49 = arith.cmpf one, %47, %48 : vector<1x256xf32>
    %cst_37 = arith.constant 0.000000e+00 : f32
    %50 = vector.shape_cast %49 : vector<1x256xi1> to vector<1x256xi1>
    %51 = vector.broadcast %50 : vector<1x256xi1> to vector<4x256xi1>
    %52 = vector.broadcast %cst_37 : f32 to vector<4x256xf32>
    %53 = arith.select %51, %46, %52 : vector<4x256xi1>, vector<4x256xf32>
    %54 = arith.truncf %53 : vector<4x256xf32> to vector<4x256xbf16>
    %c1_38 = arith.constant 1 : index
    %c0_39 = arith.constant 0 : index
    %c0_40 = arith.constant 0 : index
    %c0_41 = arith.constant 0 : index
    %55 = vector.load %arg3[%c1_38, %c0_39, %c0_40, %c0_41] : memref<3x3x4x4xbf16, #tpu.memory_space<vmem>>, vector<1x1x4x4xbf16>
    %56 = vector.shape_cast %55 : vector<1x1x4x4xbf16> to vector<4x4xbf16>
    %cst_42 = arith.constant dense<0.000000e+00> : vector<4x256xf32>
    %57 = tpu.matmul %56, %54, %cst_42 {dimension_numbers = #tpu.dot_dimension_numbers<[1], [0], [0], [1], [0, 0, 1, 1], [], []>} : vector<4x4xbf16>, vector<4x256xbf16>, vector<4x256xf32> -> vector<4x256xf32>
    %58 = arith.addf %45, %57 : vector<4x256xf32>
    %c0_43 = arith.constant 0 : index
    %c128_44 = arith.constant 128 : index
    %59 = vector.load %arg7[%c0_43, %c128_44] : memref<4x512xf32, #tpu.memory_space<vmem>>, vector<4x256xf32>
    %c4 = arith.constant 4 : index
    %c0_45 = arith.constant 0 : index
    %60 = vector.load %arg5[%c4, %c0_45] : memref<9x256xf32, #tpu.memory_space<vmem>>, vector<1x256xf32>
    %cst_46 = arith.constant 0.000000e+00 : f32
    %61 = vector.broadcast %cst_46 : f32 to vector<1x256xf32>
    %62 = arith.cmpf one, %60, %61 : vector<1x256xf32>
    %cst_47 = arith.constant 0.000000e+00 : f32
    %63 = vector.shape_cast %62 : vector<1x256xi1> to vector<1x256xi1>
    %64 = vector.broadcast %63 : vector<1x256xi1> to vector<4x256xi1>
    %65 = vector.broadcast %cst_47 : f32 to vector<4x256xf32>
    %66 = arith.select %64, %59, %65 : vector<4x256xi1>, vector<4x256xf32>
    %67 = arith.truncf %66 : vector<4x256xf32> to vector<4x256xbf16>
    %c1_48 = arith.constant 1 : index
    %c1_49 = arith.constant 1 : index
    %c0_50 = arith.constant 0 : index
    %c0_51 = arith.constant 0 : index
    %68 = vector.load %arg3[%c1_48, %c1_49, %c0_50, %c0_51] : memref<3x3x4x4xbf16, #tpu.memory_space<vmem>>, vector<1x1x4x4xbf16>
    %69 = vector.shape_cast %68 : vector<1x1x4x4xbf16> to vector<4x4xbf16>
    %cst_52 = arith.constant dense<0.000000e+00> : vector<4x256xf32>
    %70 = tpu.matmul %69, %67, %cst_52 {dimension_numbers = #tpu.dot_dimension_numbers<[1], [0], [0], [1], [0, 0, 1, 1], [], []>} : vector<4x4xbf16>, vector<4x256xbf16>, vector<4x256xf32> -> vector<4x256xf32>
    %71 = arith.addf %58, %70 : vector<4x256xf32>
    %c0_53 = arith.constant 0 : index
    %c129 = arith.constant 129 : index
    %72 = vector.load %arg7[%c0_53, %c129] : memref<4x512xf32, #tpu.memory_space<vmem>>, vector<4x256xf32>
    %c5 = arith.constant 5 : index
    %c0_54 = arith.constant 0 : index
    %73 = vector.load %arg5[%c5, %c0_54] : memref<9x256xf32, #tpu.memory_space<vmem>>, vector<1x256xf32>
    %cst_55 = arith.constant 0.000000e+00 : f32
    %74 = vector.broadcast %cst_55 : f32 to vector<1x256xf32>
    %75 = arith.cmpf one, %73, %74 : vector<1x256xf32>
    %cst_56 = arith.constant 0.000000e+00 : f32
    %76 = vector.shape_cast %75 : vector<1x256xi1> to vector<1x256xi1>
    %77 = vector.broadcast %76 : vector<1x256xi1> to vector<4x256xi1>
    %78 = vector.broadcast %cst_56 : f32 to vector<4x256xf32>
    %79 = arith.select %77, %72, %78 : vector<4x256xi1>, vector<4x256xf32>
    %80 = arith.truncf %79 : vector<4x256xf32> to vector<4x256xbf16>
    %c1_57 = arith.constant 1 : index
    %c2_58 = arith.constant 2 : index
    %c0_59 = arith.constant 0 : index
    %c0_60 = arith.constant 0 : index
    %81 = vector.load %arg3[%c1_57, %c2_58, %c0_59, %c0_60] : memref<3x3x4x4xbf16, #tpu.memory_space<vmem>>, vector<1x1x4x4xbf16>
    %82 = vector.shape_cast %81 : vector<1x1x4x4xbf16> to vector<4x4xbf16>
    %cst_61 = arith.constant dense<0.000000e+00> : vector<4x256xf32>
    %83 = tpu.matmul %82, %80, %cst_61 {dimension_numbers = #tpu.dot_dimension_numbers<[1], [0], [0], [1], [0, 0, 1, 1], [], []>} : vector<4x4xbf16>, vector<4x256xbf16>, vector<4x256xf32> -> vector<4x256xf32>
    %84 = arith.addf %71, %83 : vector<4x256xf32>
    %c0_62 = arith.constant 0 : index
    %c143 = arith.constant 143 : index
    %85 = vector.load %arg7[%c0_62, %c143] : memref<4x512xf32, #tpu.memory_space<vmem>>, vector<4x256xf32>
    %c6 = arith.constant 6 : index
    %c0_63 = arith.constant 0 : index
    %86 = vector.load %arg5[%c6, %c0_63] : memref<9x256xf32, #tpu.memory_space<vmem>>, vector<1x256xf32>
    %cst_64 = arith.constant 0.000000e+00 : f32
    %87 = vector.broadcast %cst_64 : f32 to vector<1x256xf32>
    %88 = arith.cmpf one, %86, %87 : vector<1x256xf32>
    %cst_65 = arith.constant 0.000000e+00 : f32
    %89 = vector.shape_cast %88 : vector<1x256xi1> to vector<1x256xi1>
    %90 = vector.broadcast %89 : vector<1x256xi1> to vector<4x256xi1>
    %91 = vector.broadcast %cst_65 : f32 to vector<4x256xf32>
    %92 = arith.select %90, %85, %91 : vector<4x256xi1>, vector<4x256xf32>
    %93 = arith.truncf %92 : vector<4x256xf32> to vector<4x256xbf16>
    %c2_66 = arith.constant 2 : index
    %c0_67 = arith.constant 0 : index
    %c0_68 = arith.constant 0 : index
    %c0_69 = arith.constant 0 : index
    %94 = vector.load %arg3[%c2_66, %c0_67, %c0_68, %c0_69] : memref<3x3x4x4xbf16, #tpu.memory_space<vmem>>, vector<1x1x4x4xbf16>
    %95 = vector.shape_cast %94 : vector<1x1x4x4xbf16> to vector<4x4xbf16>
    %cst_70 = arith.constant dense<0.000000e+00> : vector<4x256xf32>
    %96 = tpu.matmul %95, %93, %cst_70 {dimension_numbers = #tpu.dot_dimension_numbers<[1], [0], [0], [1], [0, 0, 1, 1], [], []>} : vector<4x4xbf16>, vector<4x256xbf16>, vector<4x256xf32> -> vector<4x256xf32>
    %97 = arith.addf %84, %96 : vector<4x256xf32>
    %c0_71 = arith.constant 0 : index
    %c144 = arith.constant 144 : index
    %98 = vector.load %arg7[%c0_71, %c144] : memref<4x512xf32, #tpu.memory_space<vmem>>, vector<4x256xf32>
    %c7 = arith.constant 7 : index
    %c0_72 = arith.constant 0 : index
    %99 = vector.load %arg5[%c7, %c0_72] : memref<9x256xf32, #tpu.memory_space<vmem>>, vector<1x256xf32>
    %cst_73 = arith.constant 0.000000e+00 : f32
    %100 = vector.broadcast %cst_73 : f32 to vector<1x256xf32>
    %101 = arith.cmpf one, %99, %100 : vector<1x256xf32>
    %cst_74 = arith.constant 0.000000e+00 : f32
    %102 = vector.shape_cast %101 : vector<1x256xi1> to vector<1x256xi1>
    %103 = vector.broadcast %102 : vector<1x256xi1> to vector<4x256xi1>
    %104 = vector.broadcast %cst_74 : f32 to vector<4x256xf32>
    %105 = arith.select %103, %98, %104 : vector<4x256xi1>, vector<4x256xf32>
    %106 = arith.truncf %105 : vector<4x256xf32> to vector<4x256xbf16>
    %c2_75 = arith.constant 2 : index
    %c1_76 = arith.constant 1 : index
    %c0_77 = arith.constant 0 : index
    %c0_78 = arith.constant 0 : index
    %107 = vector.load %arg3[%c2_75, %c1_76, %c0_77, %c0_78] : memref<3x3x4x4xbf16, #tpu.memory_space<vmem>>, vector<1x1x4x4xbf16>
    %108 = vector.shape_cast %107 : vector<1x1x4x4xbf16> to vector<4x4xbf16>
    %cst_79 = arith.constant dense<0.000000e+00> : vector<4x256xf32>
    %109 = tpu.matmul %108, %106, %cst_79 {dimension_numbers = #tpu.dot_dimension_numbers<[1], [0], [0], [1], [0, 0, 1, 1], [], []>} : vector<4x4xbf16>, vector<4x256xbf16>, vector<4x256xf32> -> vector<4x256xf32>
    %110 = arith.addf %97, %109 : vector<4x256xf32>
    %c0_80 = arith.constant 0 : index
    %c145 = arith.constant 145 : index
    %111 = vector.load %arg7[%c0_80, %c145] : memref<4x512xf32, #tpu.memory_space<vmem>>, vector<4x256xf32>
    %c8 = arith.constant 8 : index
    %c0_81 = arith.constant 0 : index
    %112 = vector.load %arg5[%c8, %c0_81] : memref<9x256xf32, #tpu.memory_space<vmem>>, vector<1x256xf32>
    %cst_82 = arith.constant 0.000000e+00 : f32
    %113 = vector.broadcast %cst_82 : f32 to vector<1x256xf32>
    %114 = arith.cmpf one, %112, %113 : vector<1x256xf32>
    %cst_83 = arith.constant 0.000000e+00 : f32
    %115 = vector.shape_cast %114 : vector<1x256xi1> to vector<1x256xi1>
    %116 = vector.broadcast %115 : vector<1x256xi1> to vector<4x256xi1>
    %117 = vector.broadcast %cst_83 : f32 to vector<4x256xf32>
    %118 = arith.select %116, %111, %117 : vector<4x256xi1>, vector<4x256xf32>
    %119 = arith.truncf %118 : vector<4x256xf32> to vector<4x256xbf16>
    %c2_84 = arith.constant 2 : index
    %c2_85 = arith.constant 2 : index
    %c0_86 = arith.constant 0 : index
    %c0_87 = arith.constant 0 : index
    %120 = vector.load %arg3[%c2_84, %c2_85, %c0_86, %c0_87] : memref<3x3x4x4xbf16, #tpu.memory_space<vmem>>, vector<1x1x4x4xbf16>
    %121 = vector.shape_cast %120 : vector<1x1x4x4xbf16> to vector<4x4xbf16>
    %cst_88 = arith.constant dense<0.000000e+00> : vector<4x256xf32>
    %122 = tpu.matmul %121, %119, %cst_88 {dimension_numbers = #tpu.dot_dimension_numbers<[1], [0], [0], [1], [0, 0, 1, 1], [], []>} : vector<4x4xbf16>, vector<4x256xbf16>, vector<4x256xf32> -> vector<4x256xf32>
    %123 = arith.addf %110, %122 : vector<4x256xf32>
    %cst_89 = arith.constant 0.000000e+00 : f32
    %124 = vector.broadcast %cst_89 : f32 to vector<4x256xf32>
    %125 = arith.maximumf %123, %124 : vector<4x256xf32>
    %126 = arith.truncf %125 : vector<4x256xf32> to vector<4x256xbf16>
    %c0_90 = arith.constant 0 : index
    %c0_91 = arith.constant 0 : index
    %127 = vector.load %arg4[%c0_90, %c0_91] : memref<16x4xbf16, #tpu.memory_space<vmem>>, vector<16x4xbf16>
    %cst_92 = arith.constant dense<0.000000e+00> : vector<16x256xf32>
    %128 = tpu.matmul %127, %126, %cst_92 {dimension_numbers = #tpu.dot_dimension_numbers<[1], [0], [0], [1], [0, 0, 1, 1], [], []>} : vector<16x4xbf16>, vector<4x256xbf16>, vector<16x256xf32> -> vector<16x256xf32>
    %129 = arith.addf %128, %1 : vector<16x256xf32>
    %cst_93 = arith.constant 0.000000e+00 : f32
    %130 = vector.broadcast %cst_93 : f32 to vector<16x256xf32>
    %131 = arith.maximumf %129, %130 : vector<16x256xf32>
    %c0_94 = arith.constant 0 : index
    %c0_95 = arith.constant 0 : index
    %c0_96 = arith.constant 0 : index
    %132 = vector.load %arg6[%c0_94, %c0_95, %c0_96] : memref<1x16x256xf32, #tpu.memory_space<vmem>>, vector<1x16x256xf32>
    %133 = vector.shape_cast %132 : vector<1x16x256xf32> to vector<16x256xf32>
    %134 = vector.shape_cast %131 : vector<16x256xf32> to vector<1x16x256xf32>
    tpu.vector_store %arg6[%c0_94, %c0_95, %c0_96], %134 {strides = array<i32>} : memref<1x16x256xf32, #tpu.memory_space<vmem>>, vector<1x16x256xf32>,
    return
  }
  func.func @transform_0(%arg0: i32) -> (i32, i32, i32) {
    %c0_i32 = arith.constant 0 : i32
    %c0_i32_0 = arith.constant 0 : i32
    %c0_i32_1 = arith.constant 0 : i32
    return %arg0, %c0_i32, %c0_i32_0 : i32, i32, i32
  }
  func.func @transform_1(%arg0: i32) -> (i32, i32) {
    %c0_i32 = arith.constant 0 : i32
    %c0_i32_0 = arith.constant 0 : i32
    %c0_i32_1 = arith.constant 0 : i32
    return %c0_i32, %c0_i32_0 : i32, i32
  }
  func.func @transform_2(%arg0: i32) -> (i32, i32, i32, i32) {
    %c0_i32 = arith.constant 0 : i32
    %c0_i32_0 = arith.constant 0 : i32
    %c0_i32_1 = arith.constant 0 : i32
    %c0_i32_2 = arith.constant 0 : i32
    %c0_i32_3 = arith.constant 0 : i32
    return %c0_i32, %c0_i32_0, %c0_i32_1, %c0_i32_2 : i32, i32, i32, i32
  }
  func.func @transform_3(%arg0: i32) -> (i32, i32) {
    %c0_i32 = arith.constant 0 : i32
    %c0_i32_0 = arith.constant 0 : i32
    %c0_i32_1 = arith.constant 0 : i32
    return %c0_i32, %c0_i32_0 : i32, i32
  }
  func.func @transform_4(%arg0: i32) -> (i32, i32) {
    %c0_i32 = arith.constant 0 : i32
    %c0_i32_0 = arith.constant 0 : i32
    %c0_i32_1 = arith.constant 0 : i32
    return %c0_i32, %c0_i32_0 : i32, i32
  }
  func.func @transform_5(%arg0: i32) -> (i32, i32, i32) {
    %c0_i32 = arith.constant 0 : i32
    %c0_i32_0 = arith.constant 0 : i32
    %c0_i32_1 = arith.constant 0 : i32
    return %arg0, %c0_i32, %c0_i32_0 : i32, i32, i32
  }
}

</mosaic_0001>

<bundles_post_ra>
// kernel: tpu_custom_call.1
= control target key start
LH: loop header
LB: loop body
LE: loop exit
PB: predicated region body
PF: predicated region fallthrough
CT: control target
= control target key end

     0   :  { %10 = vsyncpa [#allocation4], 0  ;;  %s2116_s0 = inlined_call_operand.hbm [shape: f32[2,16,256], index: 0, kind: input, shape index: {}]   ;;  %s2117_s1 = inlined_call_operand.vmem [shape: bf16[4,16], index: 1, kind: input, shape index: {}]   ;;  %s2118_s2 = inlined_call_operand.hbm [shape: bf16[3,3,4,4], index: 2, kind: input, shape index: {}]   ;;  %s2119_s3 = inlined_call_operand.vmem [shape: bf16[16,4], index: 3, kind: input, shape index: {}]   ;;  %s2120_s4 = inlined_call_operand.hbm [shape: f32[9,256], index: 4, kind: input, shape index: {}]   ;;  %s2121_s5 = inlined_call_operand.hbm [shape: f32[2,16,256], index: 5, kind: output, shape index: {}]  }
   0x1   :  { %12 = vsyncpa [#allocation4 + $0x1], 0 }
   0x2   :  { %13 = vsyncpa [#allocation7], 0 }
   0x3   :  { %14 = vsyncpa [#allocation5], 0 }
   0x4   :  { %16 = vsyncpa [#allocation5 + $0x1], 0  ;;  %s1681_s18 = smov 0   ;;  %s1683_s19 = smov 0  }
   0x5   :  { %s1685_s20 = smov 0   ;;  %s1687_s21 = smov 0  }
   0x6 LB: > { %s1702_s22 = sadd.s32 4294967295, %s1631_s21   ;;  %s1279_s23 = sadd.s32 4294967294, %s1631_s21   ;;  %s1631_s21 = sphi %s1687_s21, %s2157_s21   ;;  %s1627_s20 = sphi %s1685_s20, %s2156_s20   ;;  %s1623_s19 = sphi %s1683_s19, %s2155_s19   ;;  %s1619_s18 = sphi %s1681_s18, %s2154_s18  }
   0x7   : > { %p42_p0 = scmp.ne.s32.totalorder %s1623_s19, %s1619_s18  ;;  %p2122_p1 = scmp.eq.s32.totalorder %s1702_s22, 0 }
   0x8   : > { %p156_p3 = scmp.eq.s32.totalorder %s1279_s23, 1  ;;  %p1280_p5 = scmp.ge.s32.totalorder %s1631_s21, 1 }
   0x9   : > { %p1711_p4 = por %p2122_p1, %p42_p0  ;;  %p163_p7 = scmp.lt.s32.totalorder %s1631_s21, 3 }
   0xa   : > { %p1716_p6 = por %p156_p3, %p42_p0  ;;  %s1633_s27 = smov [#allocation6]  }
   0xb   : > { %s2125_s24 = scalar_select %p1711_p4, 1, 0 }
   0xc   : > { %s2126_s25 = scalar_select %p1716_p6, 1, 0 }
   0xd   : > { %p1721_p8 = pnand %p1280_p5, %p163_p7  ;;  %s178_s28 = sshll.u32 %s1633_s27, 4  ;;  %s1725_s28 = int_to_ptr.vmem [resolvable:$true] %s178_s28 }
   0xe   : > { %s1634_s30 = smov [#allocation8]   ;;  %s1475_s9 = scalar_lea.hbm %s2118_s2, 288 }
   0xf   : > { %p1363_p9 = pneg %p1721_p8  ;;  %s194_s6 = sshll.u32 %s1634_s30, 4  ;;  %s1736_s6 = int_to_ptr.vmem [resolvable:$true] %s194_s6 }
  0x10   : > { %p1476_p12 = scmp.ne.s32.totalorder %s2118_s2, %s1475_s9  ;;  %p1482_p5 = scmp.lt.u32.totalorder %s1475_s9, %s2118_s2 }
  0x11   : > { %p1732_p11 = pnand %p1363_p9, %p2122_p1 }
  0x13   : > { %p1477_p13 = pneg %p1732_p11 }
  0x15   : > { %p1478_p0 = pnand %p1477_p13, %p1476_p12 }
  0x17   : > { %p1479_p3 = pneg %p1478_p0 }
  0x19   : > { %p1484_p7 = pnand %p1482_p5, %p1479_p3 }
  0x1b   : > { %1487 = shalt.err (!%p1484_p7)
}
  0x1c   : > { %s1488_s14 = scalar_lea.vmem %s1725_s28, 288  ;;  %p1496_p2 = scmp.lt.s32.totalorder %s1725_s28, %s1725_s28 }
  0x1d   : > { %p1489_p9 = scmp.ne.s32.totalorder %s1725_s28, %s1488_s14  ;;  %p1497_p12 = scmp.lt.s32.totalorder %s1488_s14, %s1488_s14 }
  0x1f   : > { %p1491_p10 = pnand %p1489_p9, %p1477_p13  ;;  %p1498_p0 = por %p1497_p12, %p1496_p2 }
  0x21   : > { %p1492_p1 = pneg %p1491_p10 }
  0x23   : > { %p1499_p6 = pnand %p1498_p0, %p1492_p1 }
  0x25   : > { %1502 = shalt.err (!%p1499_p6)
}
  0x26   : > { %s1635_s15 = smov 32   ;;  %s1636_s16 = smov 2  }
  0x27   : > { %1366 = dma.hbm_to_vmem [thread:$0]  (!%p1732_p11), %s2118_s2, 288, %s1725_s28, [#allocation7], %s1635_s15, %s1635_s15, %s1636_s16  }
  0x28   : > { %s1503_s7 = scalar_lea.hbm %s2120_s4, 512 }
  0x29   : > { %p1504_p2 = scmp.ne.s32.totalorder %s2120_s4, %s1503_s7  ;;  %p1510_p10 = scmp.lt.u32.totalorder %s1503_s7, %s2120_s4 }
  0x2b   : > { %p1506_p1 = pnand %p1504_p2, %p1477_p13 }
  0x2d   : > { %p1507_p6 = pneg %p1506_p1 }
  0x2f   : > { %p1512_p3 = pnand %p1510_p10, %p1507_p6 }
  0x31   : > { %1515 = shalt.err (!%p1512_p3)
}
  0x32   : > { %s1516_s28 = scalar_lea.vmem %s1736_s6, 512  ;;  %p1524_p12 = scmp.lt.s32.totalorder %s1736_s6, %s1736_s6 }
  0x33   : > { %p1517_p5 = scmp.ne.s32.totalorder %s1736_s6, %s1516_s28  ;;  %p1525_p0 = scmp.lt.s32.totalorder %s1516_s28, %s1516_s28 }
  0x35   : > { %p1519_p7 = pnand %p1517_p5, %p1477_p13  ;;  %p1526_p2 = por %p1525_p0, %p1524_p12 }
  0x37   : > { %p1520_p9 = pneg %p1519_p7 }
  0x39   : > { %p1527_p1 = pnand %p1526_p2, %p1520_p9 }
  0x3b   : > { %1530 = shalt.err (!%p1527_p1)
}
  0x3c   : > { %s1637_s12 = smov 256   ;;  %s1638_s13 = smov 16  }
  0x3d   : > { %1369 = dma.hbm_to_vmem [thread:$0]  (!%p1732_p11), %s2120_s4, 512, %s1736_s6, [#allocation7], %s1637_s12, %s1637_s12, %s1638_s13  }
  0x3e   : > { %s1794_s16 = sadd.s32 1, %s1631_s21   ;;  %s29_s23 = sadd.s32 1, %s1627_s20 }
  0x3f   : > { %s26_s17 = ssub.s32 %s1631_s21, %s1794_s16  ;;  %p36_p6 = scmp.ne.s32.totalorder %s1627_s20, %s1623_s19 }
  0x40   : > { %p27_p13 = scmp.eq.s32.totalorder %s26_s17, 0  ;;  %p37_p10 = scmp.eq.s32.totalorder %s1631_s21, 0 }
  0x41   : > { %p2129_p5 = scmp.eq.s32.totalorder %s1702_s22, 1  ;;  %p1380_p9 = scmp.lt.s32.totalorder %s1631_s21, 2 }
  0x42   : > { %s1803_s27 = scalar_select %p27_p13, %s1627_s20, %s29_s23  }
  0x43   : > { %p38_p3 = por %p37_p10, %p36_p6  ;;  %p1807_p7 = por %p2129_p5, %p36_p6 }
  0x44   : > { %s208_s30 = sand.u32 1, %s1627_s20   ;;  %s1319_s6 = sshll.u32 %s1631_s21, 9 }
  0x45   : > { %s2130_s29 = scalar_select %p1807_p7, 1, 0 }
  0x46   : > { %s1284_s7 = sshll.u32 %s208_s30, 5  ;;  %s1817_s10 = scalar_lea.hbm %s2116_s0, %s1319_s6 }
  0x47   : > { %s212_s11 = scalar_lea.vmem [#allocation3], %s1284_s7  ;;  %p1821_p11 = pnand %p1380_p9, %p38_p3 }
  0x48   : > { %s219_s28 = sshll.u32 %s212_s11, 4  ;;  %s1825_s15 = scalar_lea.sflag [#allocation4], %s208_s30  ;;  %s1819_s28 = int_to_ptr.vmem [resolvable:$true] %s219_s28 }
  0x49   : > { %s1531_s17 = scalar_lea.hbm %s1817_s10, 512  ;;  %p1533_p0 = pneg %p1821_p11 }
  0x4a   : > { %p1532_p12 = scmp.ne.s32.totalorder %s1817_s10, %s1531_s17  ;;  %s1536_s6 = scalar_lea.hbm %s2116_s0, 1024 }
  0x4b   : > { %p1537_p13 = scmp.lt.u32.totalorder %s1817_s10, %s2116_s0  ;;  %p1538_p6 = scmp.lt.u32.totalorder %s1536_s6, %s1531_s17 }
  0x4c   : > { %p1534_p2 = pnand %p1533_p0, %p1532_p12  ;;  %p1540_p3 = scmp.lt.u32.totalorder %s1531_s17, %s1817_s10 }
  0x4d   : > { %p1539_p10 = por %p1538_p6, %p1537_p13 }
  0x4e   : > { %p1535_p1 = pneg %p1534_p2 }
  0x4f   : > { %p1541_p5 = por %p1540_p3, %p1539_p10 }
  0x51   : > { %p1542_p9 = pnand %p1541_p5, %p1535_p1 }
  0x53   : > { %1545 = shalt.err (!%p1542_p9)
}
  0x54   : > { %s1546_s30 = scalar_lea.vmem %s1819_s28, 512  ;;  %s1639_s11 = smov [#allocation3]  }
  0x55   : > { %p1547_p12 = scmp.ne.s32.totalorder %s1819_s28, %s1546_s30  ;;  %s1551_s23 = sshll.u32 %s1639_s11, 4  ;;  %s1552_s23 = int_to_ptr.vmem [resolvable:$false] %s1551_s23 }
  0x56   : > { %s1553_s7 = scalar_lea.vmem %s1552_s23, 1024  ;;  %p1554_p4 = scmp.lt.s32.totalorder %s1819_s28, %s1552_s23 }
  0x57   : > { %p1549_p2 = pnand %p1547_p12, %p1533_p0  ;;  %p1555_p13 = scmp.lt.s32.totalorder %s1553_s7, %s1546_s30 }
  0x59   : > { %p1550_p7 = pneg %p1549_p2  ;;  %p1556_p6 = por %p1555_p13, %p1554_p4 }
  0x5b   : > { %p1557_p10 = pnand %p1556_p6, %p1550_p7 }
  0x5d   : > { %1560 = shalt.err (!%p1557_p10)
}
  0x5e   : > { %1373 = dma.hbm_to_vmem [thread:$0]  (!%p1821_p11), %s1817_s10, 512, %s1819_s28, %s1825_s15, %s1637_s12, %s1637_s12, %s1638_s13  }
  0x5f   : > { %231 = sbr.rel (%p1721_p8) target bundleno = 986 (0x3da), region = 40  ;;  %s1859_s17 = sand.u32 (!%p1721_p8), 1, %s1623_s19  }
  0x60   : > { %s1288_s6 = sshll.u32 (!%p1721_p8), %s1859_s17, 5  ;;  %s234_s8 = scalar_lea.sflag (!%p1721_p8), [#allocation4], %s1859_s17 }
  0x61   : > { %s237_s14 = scalar_lea.vmem (!%p1721_p8), [#allocation3], %s1288_s6  ;;  %p2132_p4 = scmp.ne.s32.totalorder (!%p1721_p8), %s2125_s24, 0 }
  0x66   : > { %1606 = dma.done.wait (%p2132_p4), %s234_s8, 512  }
  0x67   : > { %1608 = vsyncadd (%p2132_p4), %s234_s8, 4294966784  ;;  %p2133_p7 = scmp.eq.s32.totalorder %s1702_s22, 0 }
  0x69   : > { %1610 = dma.done.wait (%p2133_p7), [#allocation7], 800   ;;  %p2134_p8 = pmov %p2133_p7 }
  0x6a   : > { %v1640_v0 = vmov 0   ;;  %v1875_v1 = vld [vmem:[%s237_s14 + $0x8] sm:$0xff]  ;;  %v1877_v2 = vld [vmem:[%s237_s14 + $0x18] sm:$0xff]  ;;  %v1879_v3 = vld [vmem:[%s237_s14] sm:$0xff]  ;;  %vm280_vm0 = vcmask 130048   ;;  %s1641_s12 = smov 127   ;;  %v337_v27 = vlaneseq }
  0x6b   : > { %1612 = vsyncadd (%p2134_p8), [#allocation7], 4294966496  ;;  %316 = vmatprep.mubr.bf16.mxu0 %v1640_v0  ;;  %663 = vmatprep.mubr.bf16.mxu1 %v1640_v0  ;;  %v279_v4 = vpack.c.bf16 %v1877_v2, %v1875_v1  ;;  %v1883_v5 = vld [vmem:[%s237_s14 + $0x10] sm:$0xff]  ;;  %v751_v17 = vld [vmem:[#allocation2 + $0xc] sm:$0xf]  ;;  %s1642_s13 = smov 1  }
  0x6c   : > { %v278_v6 = vpack.c.bf16 %v1883_v5, %v1879_v3  ;;  %v277_v7 = vld [vmem:[%s2117_s1] sm:$0x3]  ;;  %s1643_s10 = smov 16   ;;  %v839_v22 = vld [vmem:[#allocation2 + $0xc] sm:$0xf]  ;;  %s1644_s28 = smov 113  }
  0x6d   : > { %284 = vmatprep.subr.bf16.mxu0 %v279_v4  ;;  %s1645_s15 = smov 17   ;;  %v927_v24 = vld [vmem:[#allocation2 + $0xc] sm:$0xf]  ;;  %s1646_s9 = smov 112   ;;  %v338_v29 = vshrl.u32 %v337_v27, 7  ;;  %vm611_vm5 = vcmask 7168  }
  0x6e   : > { %285 = vmatpush1.bf16.msra.mxu0 %v278_v6  ;;  %s1647_s30 = smov 15   ;;  %v1015_v26 = vld [vmem:[#allocation2 + $0xc] sm:$0xf]  ;;  %s1648_s11 = smov 111   ;;  %vm775_vm10 = vcmask 1039360   ;;  %vm400_vm11 = vcmask 1041408  }
  0x6f   : > { %v676_v28 = vld [vmem:[#allocation8 + $0x4] ss:$8 sm:$0x3]  ;;  %v589_v30 = vld [vmem:[#allocation8 + $0x3] ss:$8 sm:$0x3] }
  0x70   : > { %vm677_vm1 = vcmp.ne.f32.partialorder %v676_v28, 0.0  ;;  %vm590_vm2 = vcmp.ne.f32.partialorder %v589_v30, 0.0  ;;  %v1903_v32 = vsub.s32 0, %v338_v29  ;;  %v1906_v34 = vsub.s32 1, %v338_v29  ;;  %s271_s8 = scalar_lea.vmem [#allocation9], %s1288_s6  ;;  %s1320_s24 = sshll.u32 %s1702_s22, 9 }
  0x71   : > { %1292 = vmatmul.mubr.msk.bf16.vlgmr.msra.gmra.mrb[0].mxu0 %vm280_vm0, %v277_v7  ;;  %v678_v33 = vsel %vm677_vm1, 1, %v1640_v0  ;;  %v591_v35 = vsel %vm590_vm2, 1, %v1640_v0  ;;  %v367_v36 = vld [vmem:[#allocation8 + $0x1] ss:$8 sm:$0x3]  ;;  %vm396_vm2 = vcmask 31744  }
  0x72   : > { %439 = vmatprep.mubr.bf16.mxu0 %v1640_v0  ;;  %v753_v37 = vld [vmem:[#allocation8 + $0x5] ss:$8 sm:$0x3]  ;;  %v682_v39 = vrot.slane %v678_v33, %v1903_v32  ;;  %v595_v40 = vrot.slane %v591_v35, %v1903_v32  ;;  %vm368_vm3 = vcmp.ne.f32.partialorder %v367_v36, 0.0  ;;  %v686_v41 = vrot.slane %v678_v33, %v1906_v34  ;;  %s1187_s14 = sshll.u32 %s271_s8, 4  ;;  %s1174_s22 = scalar_lea.sflag [#allocation5], %s1859_s17  ;;  %s2066_s14 = int_to_ptr.vmem [resolvable:$true] %s1187_s14 }
  0x73   : > { %vm754_vm4 = vcmp.ne.f32.partialorder %v753_v37, 0.0  ;;  %v599_v42 = vrot.slane %v591_v35, %v1906_v34  ;;  %v369_v46 = vsel %vm368_vm3, 1, %v1640_v0  ;;  %v334_v51 = vld [vmem:[#allocation8] ss:$8 sm:$0x3]  ;;  %p2151_p0 = scmp.ne.s32.totalorder %s2130_s29, 0 }
  0x74   : > { %vm687_vm6 = vcmp.eq.s32.totalorder %v682_v39, 1  ;;  %vm600_vm7 = vcmp.eq.s32.totalorder %v595_v40, 1  ;;  %v1915_v47 = vsel %vm754_vm4, 1, %v1640_v0  ;;  %vm688_vm8 = vcmp.eq.s32.totalorder %v686_v41, 1 }
  0x75   : > { %v763_v49 = vrot.slane %v1915_v47, %v1906_v34  ;;  %vm601_vm9 = vcmp.eq.s32.totalorder %v599_v42, 1  ;;  %v377_v53 = vrot.slane %v369_v46, %v1906_v34  ;;  %v373_v56 = vrot.slane %v369_v46, %v1903_v32  ;;  %v841_v61 = vld [vmem:[#allocation8 + $0x6] ss:$8 sm:$0x3] }
  0x76   : > { %vm335_vm12 = vcmp.ne.f32.partialorder %v334_v51, 0.0  ;;  %vm842_vm15 = vcmp.ne.f32.partialorder %v841_v61, 0.0 }
  0x77   : > { %vm1926_vm13 = vcmp.eq.s32.totalorder %v763_v49, 1  ;;  %vm1931_vm14 = vcmp.eq.s32.totalorder %v377_v53, 1  ;;  %vm1935_vm1 = vcmp.eq.s32.totalorder %v373_v56, 1 }
 0x144   : > { %v318_v8 = vpop.f32.mrb[0].mxu0 }
 0x145   : > { %v325_v9 = vmax.f32 %v318_v8, 0.0  ;;  %v320_v10 = vpop.f32.mrb[1].mxu0 }
 0x146   : > { %v326_v11 = vmax.f32 %v320_v10, 0.0  ;;  %v322_v12 = vpop.f32.mrb[2].mxu0 }
 0x147   : > { %v323_v13 = vpop.f32.mrb[3].mxu0 }
 0x148   : > { %v1892_v14 = vcombine.low %v325_v9, %v326_v11  ;;  %v1895_v15 = vcombine.low %v326_v11, %v326_v11 }
 0x14a   : > { %331 = vst [vmem:[#allocation2 + $0x4] sm:$0xff] %v1892_v14  ;;  %v1437_v16 = vpack.i.bf16 %v1895_v15, %v1892_v14  ;;  %v692_v55 = vsel %vm687_vm6, %v1892_v14, 0.0  ;;  %v693_v60 = vsel %vm688_vm8, %v1895_v15, 0.0 }
 0x14b   : > { %v694_v7 = vpack.c.bf16 %v692_v55, %v692_v55  ;;  %v695_v10 = vpack.c.bf16 %v693_v60, %v693_v60 }
 0x14c   : > { %1438 = vrot.lane.b32.xlu1 %v1437_v16, %s1641_s12 }
 0x14d   : > { %v702_v27 = vsel %vm400_vm11, %v694_v7, 0 }
 0x150   : > { %773 = vrot.lane.b32.xlu1 %v751_v17, %s1641_s12  ;;  %v759_v17 = vrot.slane %v1915_v47, %v1903_v32  ;;  %s2071_s12 = scalar_lea.hbm %s2121_s5, %s1320_s24 }
 0x151   : > { %v586_v18 = vld [vmem:[#allocation2] sm:$0xff]  ;;  %v333_v21 = vld [vmem:[#allocation2 + $0x8] sm:$0xf] }
 0x152   : > { %v604_v19 = vcombine.high %v586_v18, %v586_v18  ;;  %v587_v23 = vld [vmem:[#allocation2 + $0x8] sm:$0xf]  ;;  %vm1967_vm4 = vcmp.eq.s32.totalorder %v759_v17, 1 }
 0x153   : > { %v499_v25 = vld [vmem:[#allocation2 + $0x8] sm:$0xf] }
 0x154   : > { %v1432_v20 = vpack.i.bf16 %v604_v19, %v586_v18  ;;  %384 = vrot.lane.b32.xlu1 %v333_v21, %s1643_s10  ;;  %v621_v19 = vld [vmem:[#allocation6 + $0x6] sm:$0x3] }
 0x156   : > { %1433 = vrot.lane.b32.xlu0 %v1432_v20, %s1642_s13 }
 0x158   : > { %861 = vrot.lane.b32.xlu1 %v839_v22, %s1644_s28 }
 0x15a   : > { %609 = vrot.lane.b32.xlu0 %v587_v23, %s1642_s13  ;;  %v1952_v23 = vsel %vm842_vm15, 1, %v1640_v0  ;;  %vm951_vm15 = vcmask 916480   ;;  %s1561_s13 = scalar_lea.vmem %s2066_s14, 512 }
 0x15b   : > { %v851_v36 = vrot.slane %v1952_v23, %v1906_v34  ;;  %p1562_p11 = scmp.ne.s32.totalorder %s2066_s14, %s1561_s13 }
 0x15c   : > { %354 = vrot.lane.b32.xlu1 %v333_v21, %s1645_s15 }
 0x15d   : > { %vm1981_vm8 = vcmp.eq.s32.totalorder %v851_v36, 1  ;;  %v785_v36 = vld [vmem:[#allocation6 + $0xa] sm:$0x3]  ;;  %p1563_p1 = pnand %p1562_p11, %p2151_p0 }
 0x15e   : > { %1443 = vrot.lane.b32.xlu0 %v1432_v20, %s1643_s10 }
 0x15f   : > { %p1564_p3 = pneg %p1563_p1 }
 0x160   : > { %949 = vrot.lane.b32.xlu1 %v927_v24, %s1646_s9  ;;  %v501_v24 = vld [vmem:[#allocation8 + $0x2] ss:$8 sm:$0x3] }
 0x161   : > { %vm502_vm3 = vcmp.ne.f32.partialorder %v501_v24, 0.0  ;;  %v365_v24 = vld [vmem:[#allocation6] sm:$0x3] }
 0x162   : > { %1448 = vrot.lane.b32.xlu0 %v1437_v16, %s1644_s28  ;;  %s1649_s28 = smov [#allocation9]  }
 0x164   : > { %521 = vrot.lane.b32.xlu1 %v499_v25, %s1647_s30 }
 0x166   : > { %1453 = vrot.lane.b32.xlu0 %v1432_v20, %s1645_s15  ;;  %s1565_s15 = sshll.u32 %s1649_s28, 4  ;;  %s1566_s15 = int_to_ptr.vmem [resolvable:$false] %s1565_s15 }
 0x167   : > { %p1568_p5 = scmp.lt.s32.totalorder %s2066_s14, %s1566_s15 }
 0x168   : > { %1037 = vrot.lane.b32.xlu1 %v1015_v26, %s1648_s11 }
 0x16a   : > { %1458 = vrot.lane.b32.xlu0 %v1437_v16, %s1646_s9  ;;  %s1567_s9 = scalar_lea.vmem %s1566_s15, 1024 }
 0x16b   : > { %p1569_p9 = scmp.lt.s32.totalorder %s1567_s9, %s1561_s13 }
 0x16d   : > { %p1570_p12 = por %p1569_p9, %p1568_p5 }
 0x16e   : > { %1463 = vrot.lane.b32.xlu0 %v1432_v20, %s1647_s30 }
 0x16f   : > { %p1571_p2 = pnand %p1570_p12, %p1564_p3 }
 0x172   : > { %1468 = vrot.lane.b32.xlu0 %v1437_v16, %s1648_s11  ;;  %v336_v16 = vsel %vm335_vm12, 1, %v1640_v0  ;;  %vm523_vm12 = vcmask 121856  }
 0x173   : > { %v344_v28 = vrot.slane %v336_v16, %v1906_v34  ;;  %v340_v35 = vrot.slane %v336_v16, %v1903_v32 }
 0x175   : > { %vm1976_vm6 = vcmp.eq.s32.totalorder %v344_v28, 1  ;;  %v1017_v28 = vld [vmem:[#allocation8 + $0x10] ss:$8 sm:$0x3] }
 0x1be   : > { %v1901_v31 = vpop.permute.xlu1 %1438 }
 0x1bf   : > { %v1441_v57 = vunpack.i.h.bf16 %v1901_v31  ;;  %v1440_v20 = vunpack.i.l.bf16 %v1901_v31 }
 0x1c1   : > { %v776_v39 = vsel %vm775_vm10, %v1440_v20, %v1441_v57 }
 0x1c2   : > { %v774_v38 = vpop.permute.xlu1 %773 }
 0x1c3   : > { %v777_v4 = vsel %vm775_vm10, %v1441_v57, %v774_v38 }
 0x1c4   : > { %v781_v18 = vsel %vm1926_vm13, %v777_v4, 0.0  ;;  %v697_v4 = vld [vmem:[#allocation6 + $0x8] sm:$0x3] }
 0x1c5   : > { %v783_v30 = vpack.c.bf16 %v781_v18, %v781_v18 }
 0x1c6   : > { %v385_v48 = vpop.permute.xlu1 %384 }
 0x1c8   : > { %v1434_v43 = vpop.permute.xlu0 %1433 }
 0x1c9   : > { %v1436_v44 = vunpack.i.h.bf16 %v1434_v43  ;;  %v1435_v45 = vunpack.i.l.bf16 %v1434_v43 }
 0x1ca   : > { %v862_v11 = vpop.permute.xlu1 %861 }
 0x1cb   : > { %v612_v50 = vsel %vm611_vm5, %v1435_v45, %v1436_v44  ;;  %v395_v45 = vld [vmem:[#allocation6 + $0x2] sm:$0x3] }
 0x1cc   : > { %v610_v52 = vpop.permute.xlu0 %609  ;;  %v616_v54 = vsel %vm600_vm7, %v612_v50, 0.0  ;;  %vm345_vm7 = vcmp.eq.s32.totalorder %v340_v35, 1  ;;  %v780_v50 = vsel %vm1967_vm4, %v776_v39, 0.0  ;;  %vm1039_vm4 = vcmask 908288  }
 0x1cd   : > { %v613_v58 = vsel %vm611_vm5, %v1436_v44, %v610_v52  ;;  %v618_v59 = vpack.c.bf16 %v616_v54, %v616_v54  ;;  %vm356_vm5 = vcmask 138240   ;;  %v929_v44 = vld [vmem:[#allocation8 + $0x7] ss:$8 sm:$0x3] }
 0x1ce   : > { %v617_v62 = vsel %vm601_vm9, %v613_v58, 0.0  ;;  %v355_v37 = vpop.permute.xlu1 %354  ;;  %vm930_vm9 = vcmp.ne.f32.partialorder %v929_v44, 0.0 }
 0x1cf   : > { %v619_v6 = vpack.c.bf16 %v617_v62, %v617_v62  ;;  %v626_v15 = vsel %vm400_vm11, %v618_v59, 0  ;;  %v782_v62 = vpack.c.bf16 %v780_v50, %v780_v50  ;;  %v931_v8 = vsel %vm930_vm9, 1, %v1640_v0 }
 0x1d0   : > { %v1444_v9 = vpop.permute.xlu0 %1443  ;;  %v939_v17 = vrot.slane %v931_v8, %v1906_v34  ;;  %v935_v38 = vrot.slane %v931_v8, %v1903_v32 }
 0x1d1   : > { %v1446_v13 = vunpack.i.h.bf16 %v1444_v9  ;;  %v1445_v14 = vunpack.i.l.bf16 %v1444_v9  ;;  %1299 = vmatprep.subr.msk.bf16.mxu1 %vm400_vm11, %v619_v6  ;;  %v847_v6 = vrot.slane %v1952_v23, %v1903_v32 }
 0x1d2   : > { %632 = vmatpush1.bf16.msra.mxu1 %v626_v15  ;;  %v950_v55 = vpop.permute.xlu1 %949  ;;  %v790_v15 = vsel %vm400_vm11, %v782_v62, 0 }
 0x1d3   : > { %v387_v21 = vsel %vm280_vm0, %v1446_v13, %v385_v48  ;;  %v386_v22 = vsel %vm280_vm0, %v1445_v14, %v1446_v13  ;;  %1301 = vmatprep.subr.msk.bf16.mxu1 %vm400_vm11, %v695_v10  ;;  %vm863_vm0 = vcmask 924672   ;;  %v503_v48 = vsel %vm502_vm3, 1, %v1640_v0 }
 0x1d4   : > { %v391_v25 = vsel %vm1931_vm14, %v387_v21, 0.0  ;;  %v1956_v26 = vpop.permute.xlu0 %1448  ;;  %v390_v29 = vsel %vm1935_vm1, %v386_v22, 0.0  ;;  %v511_v57 = vrot.slane %v503_v48, %v1906_v34  ;;  %v507_v59 = vrot.slane %v503_v48, %v1903_v32 }
 0x1d5   : > { %1300 = vmatmul.mubr.msk.bf16.vlgmr.msra.gmra.mrb[0].mxu1 %vm396_vm2, %v621_v19  ;;  %v393_v31 = vpack.c.bf16 %v391_v25, %v391_v25  ;;  %v392_v33 = vpack.c.bf16 %v390_v29, %v390_v29  ;;  %v1451_v40 = vunpack.i.h.bf16 %v1956_v26  ;;  %v1450_v7 = vunpack.i.l.bf16 %v1956_v26 }
 0x1d6   : > { %708 = vmatpush1.bf16.msra.mxu1 %v702_v27  ;;  %739 = vmatprep.mubr.bf16.mxu1 %v1640_v0  ;;  %vm2005_vm10 = vcmp.eq.s32.totalorder %v511_v57, 1  ;;  %vm2009_vm13 = vcmp.eq.s32.totalorder %v507_v59, 1  ;;  %v522_v18 = vpop.permute.xlu1 %521  ;;  %vm852_vm14 = vcmp.eq.s32.totalorder %v847_v6, 1  ;;  %vm941_vm1 = vcmp.eq.s32.totalorder %v939_v17, 1  ;;  %v961_v59 = vld [vmem:[#allocation6 + $0xe] sm:$0x3] }
 0x1d7   : > { %1293 = vmatprep.subr.msk.bf16.mxu0 %vm400_vm11, %v393_v31  ;;  %1303 = vmatprep.subr.msk.bf16.mxu1 %vm400_vm11, %v783_v30  ;;  %v402_v41 = vsel %vm400_vm11, %v392_v33, 0  ;;  %v865_v51 = vsel %vm863_vm0, %v1451_v40, %v862_v11  ;;  %v864_v19 = vsel %vm863_vm0, %v1450_v7, %v1451_v40  ;;  %vm1018_vm0 = vcmp.ne.f32.partialorder %v1017_v28, 0.0 }
 0x1d8   : > { %v1454_v43 = vpop.permute.xlu0 %1453  ;;  %408 = vmatpush1.bf16.msra.mxu0 %v402_v41  ;;  %v869_v63 = vsel %vm1981_vm8, %v865_v51, 0.0  ;;  %v868_v29 = vsel %vm852_vm14, %v864_v19, 0.0  ;;  %v1019_v40 = vsel %vm1018_vm0, 1, %v1640_v0  ;;  %vm940_vm3 = vcmp.eq.s32.totalorder %v935_v38, 1 }
 0x1d9   : > { %v1456_v46 = vunpack.i.h.bf16 %v1454_v43  ;;  %v1455_v47 = vunpack.i.l.bf16 %v1454_v43  ;;  %v871_v16 = vpack.c.bf16 %v869_v63, %v869_v63  ;;  %v870_v33 = vpack.c.bf16 %v868_v29, %v868_v29 }
 0x1db   : > { %v358_v52 = vsel %vm356_vm5, %v1456_v46, %v355_v37  ;;  %v357_v53 = vsel %vm356_vm5, %v1455_v47, %v1456_v46  ;;  %1294 = vmatmul.mubr.msk.bf16.vlgmr.msra.gmra.mrb[4].mxu0 %vm396_vm2, %v395_v45  ;;  %v878_v41 = vsel %vm400_vm11, %v870_v33, 0  ;;  %v1027_v45 = vrot.slane %v1019_v40, %v1906_v34  ;;  %v1038_v46 = vpop.permute.xlu1 %1037  ;;  %v533_v47 = vld [vmem:[#allocation6 + $0x4] sm:$0x3] }
 0x1dc   : > { %v362_v54 = vsel %vm1976_vm6, %v358_v52, 0.0  ;;  %v1991_v56 = vpop.permute.xlu0 %1458  ;;  %v361_v58 = vsel %vm345_vm7, %v357_v53, 0.0  ;;  %489 = vmatprep.mubr.bf16.mxu0 %v1640_v0  ;;  %v873_v52 = vld [vmem:[#allocation6 + $0xc] sm:$0x3]  ;;  %v1023_v34 = vrot.slane %v1019_v40, %v1903_v32 }
 0x1dd   : > { %v364_v60 = vpack.c.bf16 %v362_v54, %v362_v54  ;;  %v363_v61 = vpack.c.bf16 %v361_v58, %v361_v58  ;;  %v1461_v20 = vunpack.i.h.bf16 %v1991_v56  ;;  %v1460_v37 = vunpack.i.l.bf16 %v1991_v56 }
 0x1de   : > { %vm1029_vm5 = vcmp.eq.s32.totalorder %v1027_v45, 1  ;;  %vm1028_vm6 = vcmp.eq.s32.totalorder %v1023_v34, 1 }
 0x1df   : > { %1295 = vmatprep.subr.msk.bf16.mxu0 %vm400_vm11, %v364_v60  ;;  %v452_v9 = vsel %vm400_vm11, %v363_v61, 0  ;;  %v953_v30 = vsel %vm951_vm15, %v1461_v20, %v950_v55  ;;  %v952_v43 = vsel %vm951_vm15, %v1460_v37, %v1461_v20  ;;  %v1049_v60 = vld [vmem:[#allocation6 + $0x10] sm:$0x3] }
 0x1e0   : > { %v1464_v11 = vpop.permute.xlu0 %1463  ;;  %458 = vmatpush1.bf16.msra.mxu0 %v452_v9  ;;  %v957_v35 = vsel %vm941_vm1, %v953_v30, 0.0  ;;  %v956_v48 = vsel %vm940_vm3, %v952_v43, 0.0 }
 0x1e1   : > { %v1466_v13 = vunpack.i.h.bf16 %v1464_v11  ;;  %v1465_v14 = vunpack.i.l.bf16 %v1464_v11  ;;  %1302 = vmatmul.mubr.msk.bf16.vlgmr.msra.gmra.mrb[0].mxu1 %vm396_vm2, %v697_v4  ;;  %v959_v42 = vpack.c.bf16 %v957_v35, %v957_v35  ;;  %v958_v50 = vpack.c.bf16 %v956_v48, %v956_v48 }
 0x1e2   : > { %796 = vmatpush1.bf16.msra.mxu1 %v790_v15  ;;  %827 = vmatprep.mubr.bf16.mxu1 %v1640_v0 }
 0x1e3   : > { %v525_v21 = vsel %vm523_vm12, %v1466_v13, %v522_v18  ;;  %v524_v22 = vsel %vm523_vm12, %v1465_v14, %v1466_v13  ;;  %1305 = vmatprep.subr.msk.bf16.mxu1 %vm400_vm11, %v871_v16  ;;  %v966_v55 = vsel %vm400_vm11, %v958_v50, 0  ;;  %v1473_v16 = vld [vmem:[%s2119_s3] sm:$0xff]  }
 0x1e4   : > { %v529_v23 = vsel %vm2005_vm10, %v525_v21, 0.0  ;;  %v528_v25 = vsel %vm2009_vm13, %v524_v22, 0.0  ;;  %v1469_v39 = vpop.permute.xlu0 %1468 }
 0x1e5   : > { %v531_v26 = vpack.c.bf16 %v529_v23, %v529_v23  ;;  %v530_v27 = vpack.c.bf16 %v528_v25, %v528_v25  ;;  %v1471_v44 = vunpack.i.h.bf16 %v1469_v39  ;;  %v1470_v53 = vunpack.i.l.bf16 %v1469_v39 }
 0x1e7   : > { %1297 = vmatprep.subr.msk.bf16.mxu0 %vm400_vm11, %v531_v26  ;;  %1296 = vmatmul.mubr.msk.bf16.vlgmr.msra.gmra.mrb[4].mxu0 %vm396_vm2, %v365_v24  ;;  %v538_v31 = vsel %vm400_vm11, %v530_v27, 0  ;;  %v1041_v49 = vsel %vm1039_vm4, %v1471_v44, %v1038_v46  ;;  %v1040_v56 = vsel %vm1039_vm4, %v1470_v53, %v1471_v44 }
 0x1e8   : > { %544 = vmatpush1.bf16.msra.mxu0 %v538_v31  ;;  %575 = vmatprep.mubr.bf16.mxu0 %v1640_v0  ;;  %v1045_v51 = vsel %vm1029_vm5, %v1041_v49, 0.0  ;;  %v1044_v57 = vsel %vm1028_vm6, %v1040_v56, 0.0 }
 0x1e9   : > { %v1047_v54 = vpack.c.bf16 %v1045_v51, %v1045_v51  ;;  %v1046_v58 = vpack.c.bf16 %v1044_v57, %v1044_v57 }
 0x1eb   : > { %v1054_v32 = vsel %vm400_vm11, %v1046_v58, 0 }
 0x1ed   : > { %1304 = vmatmul.mubr.msk.bf16.vlgmr.msra.gmra.mrb[0].mxu1 %vm396_vm2, %v785_v36 }
 0x1ee   : > { %884 = vmatpush1.bf16.msra.mxu1 %v878_v41  ;;  %915 = vmatprep.mubr.bf16.mxu1 %v1640_v0 }
 0x1ef   : > { %1307 = vmatprep.subr.msk.bf16.mxu1 %vm400_vm11, %v959_v42 }
 0x1f3   : > { %1298 = vmatmul.mubr.msk.bf16.vlgmr.msra.gmra.mrb[4].mxu0 %vm396_vm2, %v533_v47 }
 0x1f4   : > { %1154 = vmatprep.mubr.bf16.mxu0 %v1640_v0 }
 0x1f9   : > { %1306 = vmatmul.mubr.msk.bf16.vlgmr.msra.gmra.mrb[0].mxu1 %vm396_vm2, %v873_v52 }
 0x1fa   : > { %972 = vmatpush1.bf16.msra.mxu1 %v966_v55  ;;  %1003 = vmatprep.mubr.bf16.mxu1 %v1640_v0 }
 0x1fb   : > { %1309 = vmatprep.subr.msk.bf16.mxu1 %vm400_vm11, %v1047_v54 }
 0x205   : > { %1308 = vmatmul.mubr.msk.bf16.vlgmr.msra.gmra.mrb[0].mxu1 %vm396_vm2, %v961_v59 }
 0x206   : > { %1060 = vmatpush1.bf16.msra.mxu1 %v1054_v32  ;;  %1091 = vmatprep.mubr.bf16.mxu1 %v1640_v0 }
 0x211   : > { %1310 = vmatmul.mubr.msk.bf16.vlgmr.msra.gmra.mrb[0].mxu1 %vm396_vm2, %v1049_v60 }
 0x2c6   : > { %v577_v61 = vpop.f32.mrb[4].mxu0 }
 0x2c7   : > { %v579_v62 = vpop.f32.mrb[5].mxu0 }
 0x2c8   : > { %v581_v63 = vpop.f32.mrb[6].mxu0 }
 0x2c9   : > { %v582_v4 = vpop.f32.mrb[7].mxu0 }
 0x2e4   : > { %v1093_v6 = vpop.f32.mrb[0].mxu1 }
 0x2e5   : > { %v1321_v7 = vadd.f32 %v1093_v6, %v577_v61  ;;  %v1095_v8 = vpop.f32.mrb[1].mxu1 }
 0x2e6   : > { %v1322_v9 = vadd.f32 %v1095_v8, %v579_v62  ;;  %v1097_v10 = vpop.f32.mrb[2].mxu1 }
 0x2e7   : > { %v1102_v11 = vmax.f32 %v1321_v7, 0.0  ;;  %v1098_v12 = vpop.f32.mrb[3].mxu1 }
 0x2e8   : > { %v1103_v13 = vmax.f32 %v1322_v9, 0.0 }
 0x2e9   : > { %v1104_v14 = vpack.c.bf16 %v1102_v11, %v1102_v11 }
 0x2ea   : > { %v1105_v15 = vpack.c.bf16 %v1103_v13, %v1103_v13 }
 0x2eb   : > { %v1117_v0 = vsel %vm400_vm11, %v1104_v14, 0 }
 0x2ec   : > { %1312 = vmatprep.subr.msk.bf16.mxu0 %vm400_vm11, %v1105_v15 }
 0x2ed   : > { %1123 = vmatpush1.bf16.msra.mxu0 %v1117_v0 }
 0x2f0   : > { %1313 = vmatmul.mubr.msk.bf16.vlgmr.msra.gmra.mrb[8].mxu0 %vm396_vm2, %v1473_v16 }
 0x3c3   : > { %v1156_v17 = vpop.f32.mrb[8].mxu0 }
 0x3c4   : > { %v1157_v18 = vadd.f32 %v1156_v17, %v1879_v3  ;;  %v1158_v19 = vpop.f32.mrb[9].mxu0 }
 0x3c5   : > { %v1159_v20 = vadd.f32 %v1158_v19, %v1875_v1  ;;  %v1160_v21 = vpop.f32.mrb[10].mxu0 }
 0x3c6   : > { %v1165_v22 = vmax.f32 %v1157_v18, 0.0  ;;  %v1161_v23 = vadd.f32 %v1160_v21, %v1883_v5  ;;  %v1162_v24 = vpop.f32.mrb[11].mxu0 }
 0x3c7   : > { %v1166_v25 = vmax.f32 %v1159_v20, 0.0  ;;  %v1163_v26 = vadd.f32 %v1162_v24, %v1877_v2 }
 0x3c8   : > { %1169 = vst [vmem:[%s271_s8] sm:$0xff] %v1165_v22  ;;  %v1167_v3 = vmax.f32 %v1161_v23, 0.0 }
 0x3c9   : > { %1170 = vst [vmem:[%s271_s8 + $0x8] sm:$0xff] %v1166_v25  ;;  %v1168_v1 = vmax.f32 %v1163_v26, 0.0 }
 0x3ca   : > { %1171 = vst [vmem:[%s271_s8 + $0x10] sm:$0xff] %v1167_v3 }
 0x3cb   : > { %1172 = vst [vmem:[%s271_s8 + $0x18] sm:$0xff] %v1168_v1 }
 0x3cc   : > { %1574 = shalt.err (!%p1571_p2)
}
 0x3cd   : > { %s1575_s30 = scalar_lea.hbm %s2071_s12, 512  ;;  %s1579_s7 = scalar_lea.hbm %s2121_s5, 1024 }
 0x3ce   : > { %p1576_p13 = scmp.ne.s32.totalorder %s2071_s12, %s1575_s30  ;;  %p1580_p4 = scmp.lt.u32.totalorder %s2071_s12, %s2121_s5 }
 0x3cf   : > { %p1581_p7 = scmp.lt.u32.totalorder %s1579_s7, %s1575_s30  ;;  %p1583_p11 = scmp.lt.u32.totalorder %s1575_s30, %s2071_s12 }
 0x3d0   : > { %p1577_p6 = pnand %p1576_p13, %p2151_p0 }
 0x3d1   : > { %p1582_p8 = por %p1581_p7, %p1580_p4 }
 0x3d2   : > { %p1578_p10 = pneg %p1577_p6 }
 0x3d3   : > { %p1584_p1 = por %p1583_p11, %p1582_p8 }
 0x3d5   : > { %p1585_p3 = pnand %p1584_p1, %p1578_p10 }
 0x3d7   : > { %1588 = shalt.err (!%p1585_p3)
}
 0x3d8   : > { %s1650_s6 = smov 256  }
 0x3d9   : > { %1361 = dma.vmem_to_hbm [thread:$0]  (%p2151_p0), %s2066_s14, 512, %s2071_s12, %s1174_s22, %s1650_s6, %s1650_s6, %s1643_s10  }
 0x3da PF: > { %s1202_s26 = sand.u32 1, %s1619_s18   ;;  %p2152_p5 = scmp.ne.s32.totalorder %s2126_s25, 0 }
 0x3db   : > { %p2153_p9 = scmp.ge.s32.totalorder %s1631_s21, 2  ;;  %s1203_s13 = scalar_lea.sflag [#allocation5], %s1202_s26 }
 0x3dd   : > { %p1375_p12 = pnand %p2153_p9, %p2152_p5 }
 0x3df   : > { %1614 = dma.done.wait (!%p1375_p12), %s1203_s13, 512  }
 0x3e0   : > { %1616 = vsyncadd (!%p1375_p12), %s1203_s13, 4294966784  ;;  %p19_p2 = scmp.ge.s32.totalorder %s1794_s16, 4   ;;  %s2154_s18 = smov %s1623_s19 }
 0x3e1   : > { %s2155_s19 = smov %s1627_s20  ;;  %s2156_s20 = smov %s1803_s27 }
 0x3e2   : > { %s2157_s21 = smov %s1794_s16  ;;  %21 = sbr.rel (!%p19_p2) target bundleno = 6 (0x6), region = 109 }
 0x3e9   :  { %1208 = vsyncpa [#allocation4], 1 }
 0x3ea   :  { %1210 = vsyncpa [#allocation4 + $0x1], 1 }
 0x3eb   :  { %1211 = vsyncpa [#allocation7], 1 }
 0x3ec   :  { %1212 = vsyncpa [#allocation5], 1 }
 0x3ed   :  { %1214 = vsyncpa [#allocation5 + $0x1], 1 }

</bundles_post_ra>
